<compile_context>
chip_gen: v7x
topology: tpu7x:2x2x1
jax: 0.10.0
libtpu: 0.0.40
codegen_flags: <defaults>
</compile_context>

<pallas_src>
import math

import jax
import jax.numpy as jnp
import numpy as np
from jax.experimental import pallas as pl
from jax.experimental.pallas import tpu as pltpu


def _equiv_mvn_kernel(x_ref, mask_ref, smu_ref, w_ref, b_ref, mu_ref, var_ref):
    x = x_ref[...].astype(jnp.float32)                       # (R, P*d_in)
    # mu: exact per-row column selection via one-hot matmul (lane-dense output).
    mu = jnp.dot(x, smu_ref[...], preferred_element_type=jnp.float32)
    # var: exp only on the log-eigenvalue columns (mask keeps exp(0)=1 on the mu /
    # padding columns; those columns carry zero weight in W so they contribute 0),
    # then the folded block-diagonal projection plus the folded 1e-6 bias.
    e = jnp.exp(jnp.where(mask_ref[...] > 0, x, 0.0))
    var = jnp.dot(e, w_ref[...], preferred_element_type=jnp.float32) + b_ref[...]
    mu_ref[...] = mu.astype(mu_ref.dtype)
    var_ref[...] = var.astype(var_ref.dtype)


def _pack_factor(dim_y: int, d_in: int, max_pack: int = 128) -> int:
    """Rows packed per slab row so outputs (and ideally inputs) are 128-lane dense."""
    p_out = 128 // math.gcd(dim_y, 128)      # makes P*dim_y a multiple of 128
    p_in = 128 // math.gcd(d_in, 128)        # makes P*d_in a multiple of 128
    p = p_out * p_in // math.gcd(p_out, p_in)
    if p <= max_pack:
        return p
    if p_out <= max_pack:
        return p_out
    return 1


def equiv_multivariate_normal(x, idx, Q2_T, dim_y, *, block_b=1024):
    """Pallas implementation of _EquivMultivariateNormal.forward (diagonal=True)."""
    *lead, d_in = x.shape
    n_eig = d_in - dim_y
    n_idx, d_y = Q2_T.shape
    assert d_y == dim_y, "Q2_T must map the gathered spectral basis to dim_y"
    B = int(np.prod(lead)) if lead else 1

    P = _pack_factor(dim_y, d_in)

    # ---- host-side constant folding: gather + projection + eps bias ----------
    idx_np = np.asarray(idx)
    q2_np = np.asarray(Q2_T, dtype=np.float32)
    W = np.zeros((n_eig, dim_y), np.float32)
    np.add.at(W, idx_np, q2_np)                     # W = one_hot(idx) @ Q2_T
    bias = (1e-6 * q2_np.sum(axis=0)).astype(np.float32)

    din_p, dy_p = P * d_in, P * dim_y
    smu = np.zeros((din_p, dy_p), np.float32)       # per packed row: mu column select
    wbig = np.zeros((din_p, dy_p), np.float32)      # per packed row: exp(le) @ W
    mask = np.zeros((1, din_p), np.float32)         # 1.0 on log-eigenvalue columns
    for p in range(P):
        r0, c0 = p * d_in, p * dim_y
        smu[r0:r0 + dim_y, c0:c0 + dim_y] = np.eye(dim_y, dtype=np.float32)
        wbig[r0 + dim_y:r0 + d_in, c0:c0 + dim_y] = W
        mask[0, r0 + dim_y:r0 + d_in] = 1.0
    bbig = np.tile(bias, P).reshape(1, dy_p)

    # ---- tile sizing (block_b rows per grid step, packed into slab rows) -----
    rows_needed = -(-B // P)                        # ceil(B / P)
    block_rows_cap = max(1, block_b // P)
    if rows_needed <= block_rows_cap:
        block_rows = rows_needed                    # single step, block == full extent
        total_rows = rows_needed
    else:
        block_rows = max(8, (block_rows_cap // 8) * 8)     # keep sublane alignment
        total_rows = -(-rows_needed // block_rows) * block_rows
    b_pad = total_rows * P

    x2 = x.reshape(B, d_in)
    if b_pad != B:
        x2 = jnp.pad(x2, ((0, b_pad - B), (0, 0)))  # zero tail (discarded at the end)
    xp = x2.reshape(total_rows, din_p)              # free row-major reshape -> dense slab

    grid = (total_rows // block_rows,)
    mu_p, var_p = pl.pallas_call(
        _equiv_mvn_kernel,
        out_shape=(
            jax.ShapeDtypeStruct((total_rows, dy_p), x.dtype),
            jax.ShapeDtypeStruct((total_rows, dy_p), x.dtype),
        ),
        grid_spec=pltpu.PrefetchScalarGridSpec(
            num_scalar_prefetch=0,
            grid=grid,
            in_specs=[
                pl.BlockSpec((block_rows, din_p), lambda i: (i, 0)),  # packed x
                pl.BlockSpec((1, din_p), lambda i: (0, 0)),           # eig-column mask
                pl.BlockSpec((din_p, dy_p), lambda i: (0, 0)),        # mu selector
                pl.BlockSpec((din_p, dy_p), lambda i: (0, 0)),        # folded W blocks
                pl.BlockSpec((1, dy_p), lambda i: (0, 0)),            # folded bias
            ],
            out_specs=[
                pl.BlockSpec((block_rows, dy_p), lambda i: (i, 0)),   # packed mu
                pl.BlockSpec((block_rows, dy_p), lambda i: (i, 0)),   # packed var
            ],
        ),
        compiler_params=pltpu.CompilerParams(dimension_semantics=("parallel",)),
    )(xp, jnp.asarray(mask), jnp.asarray(smu), jnp.asarray(wbig), jnp.asarray(bbig))

    mu = mu_p.reshape(b_pad, dim_y)[:B].reshape(*lead, dim_y)
    var = var_p.reshape(b_pad, dim_y)[:B].reshape(*lead, dim_y)
    return mu, var


def _reference(x, idx, Q2_T, dim_y):
    mu = x[..., :dim_y]
    log_eigvals = x[..., dim_y:]
    var_irrep = jnp.exp(log_eigvals[..., idx]) + 1e-6
    var = var_irrep @ Q2_T
    return mu, var


if __name__ == "__main__":
    # Module "parameters" (buffers), built deterministically in-script.
    dim_y = 8
    n_eig = 4                                      # number of free log-eigenvalues
    idx = jnp.array([0, 0, 1, 1, 2, 2, 3, 3], dtype=jnp.int32)   # (n_idx,) = (dim_y,)
    key = jax.random.PRNGKey(0)
    k_q, k_x1, k_x2 = jax.random.split(key, 3)
    Q2_T = jax.random.normal(k_q, (idx.shape[0], dim_y), dtype=jnp.float32)

    # Case 1: (batch, seq, dim_y + n_eig) with a batch that packs exactly.
    x1 = jax.random.normal(k_x1, (2, 16, dim_y + n_eig), dtype=jnp.float32)
    mu1, var1 = jax.block_until_ready(equiv_multivariate_normal(x1, idx, Q2_T, dim_y))
    mu1_ref, var1_ref = _reference(x1, idx, Q2_T, dim_y)
    assert mu1.shape == mu1_ref.shape and var1.shape == var1_ref.shape
    assert jnp.allclose(mu1, mu1_ref, atol=1e-5, rtol=1e-5)
    assert jnp.allclose(var1, var1_ref, atol=1e-5, rtol=1e-5)

    # Case 2: ragged batch (exercises the zero-pad tail path).
    x2 = jax.random.normal(k_x2, (3, 50, dim_y + n_eig), dtype=jnp.float32)
    mu2, var2 = jax.block_until_ready(equiv_multivariate_normal(x2, idx, Q2_T, dim_y))
    mu2_ref, var2_ref = _reference(x2, idx, Q2_T, dim_y)
    assert mu2.shape == mu2_ref.shape and var2.shape == var2_ref.shape
    assert jnp.allclose(mu2, mu2_ref, atol=1e-5, rtol=1e-5)
    assert jnp.allclose(var2, var2_ref, atol=1e-5, rtol=1e-5)

    print("KERNEL_OK")
</pallas_src>

<mosaic_0001>
module attributes {stable_mosaic.version = 11 : i64} {
  func.func @_equiv_mvn_kernel(%arg0: i32, %arg1: memref<1x384xf32, #tpu.memory_space<vmem>>, %arg2: memref<1x384xf32, #tpu.memory_space<vmem>>, %arg3: memref<384x256xf32, #tpu.memory_space<vmem>>, %arg4: memref<384x256xf32, #tpu.memory_space<vmem>>, %arg5: memref<1x256xf32, #tpu.memory_space<vmem>>, %arg6: memref<1x256xf32, #tpu.memory_space<vmem>>, %arg7: memref<1x256xf32, #tpu.memory_space<vmem>>) attributes {dimension_semantics = [#tpu.dimension_semantics<parallel>], iteration_bounds = array<i64: 1>, scalar_prefetch = 0 : i64, scratch_operands = 0 : i64, tpu.core_type = #tpu.core_type<tc>, window_params = [{transform_indices = @transform_0, window_bounds = array<i64: 1, 384>}, {pipeline_mode = #tpu.pipeline_mode<synchronous>, transform_indices = @transform_1, window_bounds = array<i64: 1, 384>}, {pipeline_mode = #tpu.pipeline_mode<synchronous>, transform_indices = @transform_2, window_bounds = array<i64: 384, 256>}, {pipeline_mode = #tpu.pipeline_mode<synchronous>, transform_indices = @transform_3, window_bounds = array<i64: 384, 256>}, {pipeline_mode = #tpu.pipeline_mode<synchronous>, transform_indices = @transform_4, window_bounds = array<i64: 1, 256>}, {transform_indices = @transform_5, window_bounds = array<i64: 1, 256>}, {transform_indices = @transform_6, window_bounds = array<i64: 1, 256>}]} {
    %c0 = arith.constant 0 : index
    %c0_0 = arith.constant 0 : index
    %0 = vector.load %arg1[%c0, %c0_0] : memref<1x384xf32, #tpu.memory_space<vmem>>, vector<1x384xf32>
    %c0_1 = arith.constant 0 : index
    %c0_2 = arith.constant 0 : index
    %1 = vector.load %arg3[%c0_1, %c0_2] : memref<384x256xf32, #tpu.memory_space<vmem>>, vector<384x256xf32>
    %cst = arith.constant dense<0.000000e+00> : vector<1x256xf32>
    %2 = tpu.matmul %0, %1, %cst {dimension_numbers = #tpu.dot_dimension_numbers<[1], [0], [0], [1], [0, 0, 1, 1], [], []>} : vector<1x384xf32>, vector<384x256xf32>, vector<1x256xf32> -> vector<1x256xf32>
    %c0_3 = arith.constant 0 : index
    %c0_4 = arith.constant 0 : index
    %3 = vector.load %arg2[%c0_3, %c0_4] : memref<1x384xf32, #tpu.memory_space<vmem>>, vector<1x384xf32>
    %cst_5 = arith.constant 0.000000e+00 : f32
    %4 = vector.broadcast %cst_5 : f32 to vector<1x384xf32>
    %5 = arith.cmpf ogt, %3, %4 : vector<1x384xf32>
    %cst_6 = arith.constant 0.000000e+00 : f32
    %6 = vector.broadcast %cst_6 : f32 to vector<1x384xf32>
    %7 = arith.select %5, %0, %6 : vector<1x384xi1>, vector<1x384xf32>
    %8 = math.exp %7 : vector<1x384xf32>
    %c0_7 = arith.constant 0 : index
    %c0_8 = arith.constant 0 : index
    %9 = vector.load %arg4[%c0_7, %c0_8] : memref<384x256xf32, #tpu.memory_space<vmem>>, vector<384x256xf32>
    %cst_9 = arith.constant dense<0.000000e+00> : vector<1x256xf32>
    %10 = tpu.matmul %8, %9, %cst_9 {dimension_numbers = #tpu.dot_dimension_numbers<[1], [0], [0], [1], [0, 0, 1, 1], [], []>} : vector<1x384xf32>, vector<384x256xf32>, vector<1x256xf32> -> vector<1x256xf32>
    %c0_10 = arith.constant 0 : index
    %c0_11 = arith.constant 0 : index
    %11 = vector.load %arg5[%c0_10, %c0_11] : memref<1x256xf32, #tpu.memory_space<vmem>>, vector<1x256xf32>
    %12 = arith.addf %10, %11 : vector<1x256xf32>
    %c0_12 = arith.constant 0 : index
    %c0_13 = arith.constant 0 : index
    %13 = vector.load %arg6[%c0_12, %c0_13] : memref<1x256xf32, #tpu.memory_space<vmem>>, vector<1x256xf32>
    tpu.vector_store %arg6[%c0_12, %c0_13], %2 {strides = array<i32>} : memref<1x256xf32, #tpu.memory_space<vmem>>, vector<1x256xf32>,
    %c0_14 = arith.constant 0 : index
    %c0_15 = arith.constant 0 : index
    %14 = vector.load %arg7[%c0_14, %c0_15] : memref<1x256xf32, #tpu.memory_space<vmem>>, vector<1x256xf32>
    tpu.vector_store %arg7[%c0_14, %c0_15], %12 {strides = array<i32>} : memref<1x256xf32, #tpu.memory_space<vmem>>, vector<1x256xf32>,
    return
  }
  func.func @transform_0(%arg0: i32) -> (i32, i32) {
    %c0_i32 = arith.constant 0 : i32
    %c0_i32_0 = arith.constant 0 : i32
    return %arg0, %c0_i32 : i32, i32
  }
  func.func @transform_1(%arg0: i32) -> (i32, i32) {
    %c0_i32 = arith.constant 0 : i32
    %c0_i32_0 = arith.constant 0 : i32
    %c0_i32_1 = arith.constant 0 : i32
    return %c0_i32, %c0_i32_0 : i32, i32
  }
  func.func @transform_2(%arg0: i32) -> (i32, i32) {
    %c0_i32 = arith.constant 0 : i32
    %c0_i32_0 = arith.constant 0 : i32
    %c0_i32_1 = arith.constant 0 : i32
    return %c0_i32, %c0_i32_0 : i32, i32
  }
  func.func @transform_3(%arg0: i32) -> (i32, i32) {
    %c0_i32 = arith.constant 0 : i32
    %c0_i32_0 = arith.constant 0 : i32
    %c0_i32_1 = arith.constant 0 : i32
    return %c0_i32, %c0_i32_0 : i32, i32
  }
  func.func @transform_4(%arg0: i32) -> (i32, i32) {
    %c0_i32 = arith.constant 0 : i32
    %c0_i32_0 = arith.constant 0 : i32
    %c0_i32_1 = arith.constant 0 : i32
    return %c0_i32, %c0_i32_0 : i32, i32
  }
  func.func @transform_5(%arg0: i32) -> (i32, i32) {
    %c0_i32 = arith.constant 0 : i32
    %c0_i32_0 = arith.constant 0 : i32
    return %arg0, %c0_i32 : i32, i32
  }
  func.func @transform_6(%arg0: i32) -> (i32, i32) {
    %c0_i32 = arith.constant 0 : i32
    %c0_i32_0 = arith.constant 0 : i32
    return %arg0, %c0_i32 : i32, i32
  }
}

</mosaic_0001>

<bundles_post_ra>
// kernel: tpu_custom_call.1
= control target key start
LH: loop header
LB: loop body
LE: loop exit
PB: predicated region body
PF: predicated region fallthrough
CT: control target
= control target key end

     0   :  { %12 = vsyncpa [#allocation3], 0  ;;  %s1141_s0 = inlined_call_operand.hbm [shape: f32[1,384], index: 0, kind: input, shape index: {}]   ;;  %s1142_s1 = inlined_call_operand.vmem [shape: f32[1,384], index: 1, kind: input, shape index: {}]   ;;  %s1143_s2 = inlined_call_operand.hbm [shape: f32[384,256], index: 2, kind: input, shape index: {}]   ;;  %s1144_s3 = inlined_call_operand.hbm [shape: f32[384,256], index: 3, kind: input, shape index: {}]   ;;  %s1145_s4 = inlined_call_operand.vmem [shape: f32[1,256], index: 4, kind: input, shape index: {}]   ;;  %s1146_s5 = inlined_call_operand.hbm [shape: f32[1,256], index: 5, kind: output, shape index: {0}]   ;;  %s1147_s6 = inlined_call_operand.hbm [shape: f32[1,256], index: 6, kind: output, shape index: {1}]  }
   0x1   :  { %13 = vsyncpa [#allocation6], 0 }
   0x2   :  { %14 = vsyncpa [#allocation4], 0 }
   0x3   :  { %15 = vsyncpa [#allocation10], 0  ;;  %s988_s21 = smov [#allocation5]   ;;  %s870_s25 = scalar_lea.hbm %s1143_s2, 12288 }
   0x4   :  { %s33_s22 = sshll.u32 %s988_s21, 4  ;;  %p871_p0 = scmp.ne.s32.totalorder %s1143_s2, %s870_s25  ;;  %s34_s22 = int_to_ptr.vmem [resolvable:$true] %s33_s22 }
   0x5   :  { %p874_p1 = scmp.lt.u32.totalorder %s870_s25, %s1143_s2 }
   0x7   :  { %p876_p2 = pnand %p874_p1, %p871_p0 }
   0x9   :  { %879 = shalt.err (!%p876_p2)
}
   0xa   :  { %s880_s30 = scalar_lea.vmem %s34_s22, 12288  ;;  %p885_p4 = scmp.lt.s32.totalorder %s34_s22, %s34_s22 }
   0xb   :  { %p881_p3 = scmp.ne.s32.totalorder %s34_s22, %s880_s30  ;;  %p886_p5 = scmp.lt.s32.totalorder %s880_s30, %s880_s30 }
   0xd   :  { %p887_p6 = por %p886_p5, %p885_p4 }
   0xf   :  { %p888_p7 = pnand %p887_p6, %p881_p3 }
  0x11   :  { %891 = shalt.err (!%p888_p7)
}
  0x12   :  { %s989_s7 = smov 256   ;;  %s990_s8 = smov 16  }
  0x13   :  { %39 = dma.hbm_to_vmem [thread:$0]  %s1143_s2, 12288, %s34_s22, [#allocation6], %s989_s7, %s989_s7, %s990_s8  }
  0x14   :  { %s991_s11 = smov [#allocation2]   ;;  %s992_s13 = smov [#allocation7]  }
  0x15   :  { %s22_s12 = sshll.u32 %s991_s11, 4  ;;  %s45_s14 = sshll.u32 %s992_s13, 4  ;;  %s23_s12 = int_to_ptr.vmem [resolvable:$true] %s22_s12  ;;  %s46_s14 = int_to_ptr.vmem [resolvable:$true] %s45_s14 }
  0x16   :  { %s892_s17 = scalar_lea.hbm %s1141_s0, 48 }
  0x17   :  { %p893_p8 = scmp.ne.s32.totalorder %s1141_s0, %s892_s17  ;;  %p896_p9 = scmp.lt.u32.totalorder %s892_s17, %s1141_s0 }
  0x19   :  { %p898_p10 = pnand %p896_p9, %p893_p8 }
  0x1b   :  { %901 = shalt.err (!%p898_p10)
}
  0x1c   :  { %s902_s2 = scalar_lea.vmem %s23_s12, 48  ;;  %s906_s22 = scalar_lea.vmem %s23_s12, 64 }
  0x1d   :  { %p903_p11 = scmp.ne.s32.totalorder %s23_s12, %s902_s2  ;;  %p907_p12 = scmp.lt.s32.totalorder %s23_s12, %s23_s12 }
  0x1e   :  { %p908_p13 = scmp.lt.s32.totalorder %s906_s22, %s902_s2 }
  0x20   :  { %p909_p0 = por %p908_p13, %p907_p12 }
  0x22   :  { %p910_p1 = pnand %p909_p0, %p903_p11 }
  0x24   :  { %913 = shalt.err (!%p910_p1)
}
  0x25   :  { %25 = dma.hbm_to_vmem [thread:$0]  %s1141_s0, 48, %s23_s12, [#allocation3]  }
  0x26   :  { %s914_s27 = scalar_lea.hbm %s1144_s3, 12288 }
  0x27   :  { %p915_p2 = scmp.ne.s32.totalorder %s1144_s3, %s914_s27  ;;  %p918_p3 = scmp.lt.u32.totalorder %s914_s27, %s1144_s3 }
  0x29   :  { %p920_p4 = pnand %p918_p3, %p915_p2 }
  0x2b   :  { %923 = shalt.err (!%p920_p4)
}
  0x2c   :  { %s924_s10 = scalar_lea.vmem %s46_s14, 12288  ;;  %p929_p6 = scmp.lt.s32.totalorder %s46_s14, %s46_s14 }
  0x2d   :  { %p925_p5 = scmp.ne.s32.totalorder %s46_s14, %s924_s10  ;;  %p930_p7 = scmp.lt.s32.totalorder %s924_s10, %s924_s10 }
  0x2f   :  { %p931_p8 = por %p930_p7, %p929_p6 }
  0x31   :  { %p932_p9 = pnand %p931_p8, %p925_p5 }
  0x33   :  { %935 = shalt.err (!%p932_p9)
}
  0x34   :  { %51 = dma.hbm_to_vmem [thread:$0]  %s1144_s3, 12288, %s46_s14, [#allocation6], %s989_s7, %s989_s7, %s990_s8  }
  0x35   :  { %980 = dma.done.wait [#allocation3], 48  }
  0x36   :  { %981 = vsyncadd [#allocation3], 4294967248 }
  0x37   :  { %982 = dma.done.wait [#allocation6], 24576  }
  0x38   :  { %983 = vsyncadd [#allocation6], 4294942720  ;;  %v65_v0 = vld [vmem:[#allocation5 + $0x8] sm:$0xff]  ;;  %v67_v1 = vld [vmem:[#allocation5 + $0x18] sm:$0xff]  ;;  %s995_s12 = smov [#allocation8]  }
  0x39   :  { %v324_v2 = vld [vmem:[#allocation7 + $0x8] sm:$0xff]  ;;  %v661_v3 = vpack.c.bf16 %v67_v1, %v65_v0  ;;  %v326_v4 = vld [vmem:[#allocation7 + $0x18] sm:$0xff]  ;;  %v64_v5 = vld [vmem:[#allocation5] sm:$0xff]  ;;  %s637_s13 = sshll.u32 %s995_s12, 4  ;;  %s638_s13 = int_to_ptr.vmem [resolvable:$true] %s637_s13 }
  0x3a   :  { %v66_v6 = vld [vmem:[#allocation5 + $0x10] sm:$0xff]  ;;  %v757_v7 = vpack.c.bf16 %v326_v4, %v324_v2  ;;  %v323_v9 = vld [vmem:[#allocation7] sm:$0xff]  ;;  %v69_v11 = vld [vmem:[#allocation5 + $0x28] sm:$0xff]  ;;  %s936_s15 = scalar_lea.vmem %s638_s13, 32  ;;  %p941_p11 = scmp.lt.s32.totalorder %s638_s13, %s638_s13 }
  0x3b   :  { %v663_v8 = vpack.c.bf16 %v66_v6, %v64_v5  ;;  %v325_v10 = vld [vmem:[#allocation7 + $0x10] sm:$0xff]  ;;  %662 = vmatprep.subr.bf16.mxu0 %v661_v3  ;;  %v71_v13 = vld [vmem:[#allocation5 + $0x38] sm:$0xff]  ;;  %v328_v14 = vld [vmem:[#allocation7 + $0x28] sm:$0xff]  ;;  %p937_p10 = scmp.ne.s32.totalorder %s638_s13, %s936_s15  ;;  %p942_p12 = scmp.lt.s32.totalorder %s936_s15, %s936_s15 }
  0x3c   :  { %v759_v12 = vpack.c.bf16 %v325_v10, %v323_v9  ;;  %v330_v15 = vld [vmem:[#allocation7 + $0x38] sm:$0xff]  ;;  %758 = vmatprep.subr.bf16.mxu1 %v757_v7  ;;  %v665_v16 = vpack.c.bf16 %v71_v13, %v69_v11  ;;  %v68_v18 = vld [vmem:[#allocation5 + $0x20] sm:$0xff]  ;;  %v70_v19 = vld [vmem:[#allocation5 + $0x30] sm:$0xff] }
  0x3d   :  { %664 = vmatpush1.bf16.msra.mxu0 %v663_v8  ;;  %v761_v17 = vpack.c.bf16 %v330_v15, %v328_v14  ;;  %v327_v20 = vld [vmem:[#allocation7 + $0x20] sm:$0xff]  ;;  %v667_v21 = vpack.c.bf16 %v70_v19, %v68_v18  ;;  %v329_v22 = vld [vmem:[#allocation7 + $0x30] sm:$0xff]  ;;  %v73_v23 = vld [vmem:[#allocation5 + $0x48] sm:$0xff]  ;;  %p943_p13 = por %p942_p12, %p941_p11 }
  0x3e   :  { %760 = vmatpush1.bf16.msra.mxu1 %v759_v12  ;;  %v75_v24 = vld [vmem:[#allocation5 + $0x58] sm:$0xff]  ;;  %666 = vmatprep.subr.bf16.mxu0 %v665_v16  ;;  %v763_v25 = vpack.c.bf16 %v329_v22, %v327_v20  ;;  %v332_v27 = vld [vmem:[#allocation7 + $0x48] sm:$0xff]  ;;  %v72_v29 = vld [vmem:[#allocation5 + $0x40] sm:$0xff] }
  0x3f   :  { %762 = vmatprep.subr.bf16.mxu1 %v761_v17  ;;  %v669_v26 = vpack.c.bf16 %v75_v24, %v73_v23  ;;  %v334_v28 = vld [vmem:[#allocation7 + $0x58] sm:$0xff]  ;;  %v74_v31 = vld [vmem:[#allocation5 + $0x50] sm:$0xff]  ;;  %v331_v32 = vld [vmem:[#allocation7 + $0x40] sm:$0xff]  ;;  %p944_p0 = pnand %p943_p13, %p937_p10 }
  0x40   :  { %v765_v30 = vpack.c.bf16 %v334_v28, %v332_v27  ;;  %v333_v33 = vld [vmem:[#allocation7 + $0x50] sm:$0xff]  ;;  %v671_v34 = vpack.c.bf16 %v74_v31, %v72_v29  ;;  %v77_v35 = vld [vmem:[#allocation5 + $0x68] sm:$0xff]  ;;  %v79_v36 = vld [vmem:[#allocation5 + $0x78] sm:$0xff] }
  0x41   :  { %668 = vmatpush1.bf16.msra.mxu0 %v667_v21  ;;  %v336_v37 = vld [vmem:[#allocation7 + $0x68] sm:$0xff]  ;;  %v767_v38 = vpack.c.bf16 %v333_v33, %v331_v32  ;;  %v673_v39 = vpack.c.bf16 %v79_v36, %v77_v35  ;;  %v338_v40 = vld [vmem:[#allocation7 + $0x78] sm:$0xff]  ;;  %v76_v41 = vld [vmem:[#allocation5 + $0x60] sm:$0xff] }
  0x42   :  { %764 = vmatpush1.bf16.msra.mxu1 %v763_v25  ;;  %670 = vmatprep.subr.bf16.mxu0 %v669_v26  ;;  %v78_v42 = vld [vmem:[#allocation5 + $0x70] sm:$0xff]  ;;  %v769_v43 = vpack.c.bf16 %v338_v40, %v336_v37  ;;  %v335_v44 = vld [vmem:[#allocation7 + $0x60] sm:$0xff]  ;;  %v81_v46 = vld [vmem:[#allocation5 + $0x88] sm:$0xff] }
  0x43   :  { %766 = vmatprep.subr.bf16.mxu1 %v765_v30  ;;  %v337_v45 = vld [vmem:[#allocation7 + $0x70] sm:$0xff]  ;;  %v83_v47 = vld [vmem:[#allocation5 + $0x98] sm:$0xff]  ;;  %v340_v48 = vld [vmem:[#allocation7 + $0x88] sm:$0xff]  ;;  %v675_v50 = vpack.c.bf16 %v78_v42, %v76_v41 }
  0x44   :  { %v342_v49 = vld [vmem:[#allocation7 + $0x98] sm:$0xff]  ;;  %v771_v51 = vpack.c.bf16 %v337_v45, %v335_v44  ;;  %v677_v52 = vpack.c.bf16 %v83_v47, %v81_v46  ;;  %v80_v53 = vld [vmem:[#allocation5 + $0x80] sm:$0xff]  ;;  %v82_v54 = vld [vmem:[#allocation5 + $0x90] sm:$0xff]  ;;  %v161_v46 = vlaneseq }
  0x45   :  { %672 = vmatpush1.bf16.msra.mxu0 %v671_v34  ;;  %v339_v55 = vld [vmem:[#allocation7 + $0x80] sm:$0xff]  ;;  %v773_v56 = vpack.c.bf16 %v342_v49, %v340_v48  ;;  %v341_v57 = vld [vmem:[#allocation7 + $0x90] sm:$0xff]  ;;  %v85_v58 = vld [vmem:[#allocation5 + $0xa8] sm:$0xff]  ;;  %v679_v62 = vpack.c.bf16 %v82_v54, %v80_v53 }
  0x46   :  { %768 = vmatpush1.bf16.msra.mxu1 %v767_v38  ;;  %674 = vmatprep.subr.bf16.mxu0 %v673_v39  ;;  %v87_v59 = vld [vmem:[#allocation5 + $0xb8] sm:$0xff]  ;;  %v344_v60 = vld [vmem:[#allocation7 + $0xa8] sm:$0xff]  ;;  %v775_v63 = vpack.c.bf16 %v341_v57, %v339_v55  ;;  %v84_v1 = vld [vmem:[#allocation5 + $0xa0] sm:$0xff]  ;;  %vm1109_vm1 = vcmp.lt.s32.totalorder %v161_v46, 256 }
  0x47   :  { %770 = vmatprep.subr.bf16.mxu1 %v769_v43  ;;  %v346_v61 = vld [vmem:[#allocation7 + $0xb8] sm:$0xff]  ;;  %v681_v0 = vpack.c.bf16 %v87_v59, %v85_v58  ;;  %v86_v2 = vld [vmem:[#allocation5 + $0xb0] sm:$0xff]  ;;  %v343_v3 = vld [vmem:[#allocation7 + $0xa0] sm:$0xff]  ;;  %v1075_v59 = vshrl.u32 %v161_v46, 7 }
  0x48   :  { %v777_v4 = vpack.c.bf16 %v346_v61, %v344_v60  ;;  %v345_v5 = vld [vmem:[#allocation7 + $0xb0] sm:$0xff]  ;;  %v89_v6 = vld [vmem:[#allocation5 + $0xc8] sm:$0xff]  ;;  %v91_v7 = vld [vmem:[#allocation5 + $0xd8] sm:$0xff]  ;;  %v683_v10 = vpack.c.bf16 %v86_v2, %v84_v1 }
  0x49   :  { %676 = vmatpush1.bf16.msra.mxu0 %v675_v50  ;;  %v348_v8 = vld [vmem:[#allocation7 + $0xc8] sm:$0xff]  ;;  %v350_v9 = vld [vmem:[#allocation7 + $0xd8] sm:$0xff]  ;;  %v779_v11 = vpack.c.bf16 %v345_v5, %v343_v3  ;;  %v685_v12 = vpack.c.bf16 %v91_v7, %v89_v6  ;;  %v88_v13 = vld [vmem:[#allocation5 + $0xc0] sm:$0xff] }
  0x4a   :  { %772 = vmatpush1.bf16.msra.mxu1 %v771_v51  ;;  %678 = vmatprep.subr.bf16.mxu0 %v677_v52  ;;  %v90_v14 = vld [vmem:[#allocation5 + $0xd0] sm:$0xff]  ;;  %v347_v15 = vld [vmem:[#allocation7 + $0xc0] sm:$0xff]  ;;  %v781_v16 = vpack.c.bf16 %v350_v9, %v348_v8  ;;  %v93_v18 = vld [vmem:[#allocation5 + $0xe8] sm:$0xff]  ;;  %v1078_v8 = vsub.s32 1, %v1075_v59 }
  0x4b   :  { %774 = vmatprep.subr.bf16.mxu1 %v773_v56  ;;  %v349_v17 = vld [vmem:[#allocation7 + $0xd0] sm:$0xff]  ;;  %v95_v19 = vld [vmem:[#allocation5 + $0xf8] sm:$0xff]  ;;  %v352_v20 = vld [vmem:[#allocation7 + $0xe8] sm:$0xff]  ;;  %v687_v22 = vpack.c.bf16 %v90_v14, %v88_v13 }
  0x4c   :  { %v354_v21 = vld [vmem:[#allocation7 + $0xf8] sm:$0xff]  ;;  %v783_v23 = vpack.c.bf16 %v349_v17, %v347_v15  ;;  %v689_v24 = vpack.c.bf16 %v95_v19, %v93_v18  ;;  %v92_v25 = vld [vmem:[#allocation5 + $0xe0] sm:$0xff]  ;;  %v94_v26 = vld [vmem:[#allocation5 + $0xf0] sm:$0xff] }
  0x4d   :  { %680 = vmatpush1.bf16.msra.mxu0 %v679_v62  ;;  %v351_v27 = vld [vmem:[#allocation7 + $0xe0] sm:$0xff]  ;;  %v785_v28 = vpack.c.bf16 %v354_v21, %v352_v20  ;;  %v353_v29 = vld [vmem:[#allocation7 + $0xf0] sm:$0xff]  ;;  %v97_v30 = vld [vmem:[#allocation5 + $0x108] sm:$0xff]  ;;  %v691_v34 = vpack.c.bf16 %v94_v26, %v92_v25 }
  0x4e   :  { %776 = vmatpush1.bf16.msra.mxu1 %v775_v63  ;;  %682 = vmatprep.subr.bf16.mxu0 %v681_v0  ;;  %v99_v31 = vld [vmem:[#allocation5 + $0x118] sm:$0xff]  ;;  %v356_v32 = vld [vmem:[#allocation7 + $0x108] sm:$0xff]  ;;  %v787_v35 = vpack.c.bf16 %v353_v29, %v351_v27  ;;  %v96_v37 = vld [vmem:[#allocation5 + $0x100] sm:$0xff] }
  0x4f   :  { %778 = vmatprep.subr.bf16.mxu1 %v777_v4  ;;  %v358_v33 = vld [vmem:[#allocation7 + $0x118] sm:$0xff]  ;;  %v693_v36 = vpack.c.bf16 %v99_v31, %v97_v30  ;;  %v98_v38 = vld [vmem:[#allocation5 + $0x110] sm:$0xff]  ;;  %v355_v39 = vld [vmem:[#allocation7 + $0x100] sm:$0xff] }
  0x50   :  { %v789_v40 = vpack.c.bf16 %v358_v33, %v356_v32  ;;  %v357_v41 = vld [vmem:[#allocation7 + $0x110] sm:$0xff]  ;;  %v101_v42 = vld [vmem:[#allocation5 + $0x128] sm:$0xff]  ;;  %v103_v43 = vld [vmem:[#allocation5 + $0x138] sm:$0xff]  ;;  %v695_v47 = vpack.c.bf16 %v98_v38, %v96_v37 }
  0x51   :  { %684 = vmatpush1.bf16.msra.mxu0 %v683_v10  ;;  %v360_v44 = vld [vmem:[#allocation7 + $0x128] sm:$0xff]  ;;  %v362_v45 = vld [vmem:[#allocation7 + $0x138] sm:$0xff]  ;;  %v791_v48 = vpack.c.bf16 %v357_v41, %v355_v39  ;;  %v697_v49 = vpack.c.bf16 %v103_v43, %v101_v42  ;;  %v100_v50 = vld [vmem:[#allocation5 + $0x120] sm:$0xff] }
  0x52   :  { %780 = vmatpush1.bf16.msra.mxu1 %v779_v11  ;;  %686 = vmatprep.subr.bf16.mxu0 %v685_v12  ;;  %v102_v51 = vld [vmem:[#allocation5 + $0x130] sm:$0xff]  ;;  %v359_v52 = vld [vmem:[#allocation7 + $0x120] sm:$0xff]  ;;  %v793_v53 = vpack.c.bf16 %v362_v45, %v360_v44  ;;  %v105_v55 = vld [vmem:[#allocation5 + $0x148] sm:$0xff] }
  0x53   :  { %782 = vmatprep.subr.bf16.mxu1 %v781_v16  ;;  %v361_v54 = vld [vmem:[#allocation7 + $0x130] sm:$0xff]  ;;  %v107_v56 = vld [vmem:[#allocation5 + $0x158] sm:$0xff]  ;;  %v364_v57 = vld [vmem:[#allocation7 + $0x148] sm:$0xff]  ;;  %v699_v60 = vpack.c.bf16 %v102_v51, %v100_v50 }
  0x54   :  { %v366_v58 = vld [vmem:[#allocation7 + $0x158] sm:$0xff]  ;;  %v795_v61 = vpack.c.bf16 %v361_v54, %v359_v52  ;;  %v701_v62 = vpack.c.bf16 %v107_v56, %v105_v55  ;;  %v104_v63 = vld [vmem:[#allocation5 + $0x140] sm:$0xff]  ;;  %v106_v0 = vld [vmem:[#allocation5 + $0x150] sm:$0xff] }
  0x55   :  { %688 = vmatpush1.bf16.msra.mxu0 %v687_v22  ;;  %v363_v1 = vld [vmem:[#allocation7 + $0x140] sm:$0xff]  ;;  %v797_v2 = vpack.c.bf16 %v366_v58, %v364_v57  ;;  %v365_v3 = vld [vmem:[#allocation7 + $0x150] sm:$0xff]  ;;  %v109_v4 = vld [vmem:[#allocation5 + $0x168] sm:$0xff]  ;;  %v703_v9 = vpack.c.bf16 %v106_v0, %v104_v63 }
  0x56   :  { %784 = vmatpush1.bf16.msra.mxu1 %v783_v23  ;;  %690 = vmatprep.subr.bf16.mxu0 %v689_v24  ;;  %v111_v5 = vld [vmem:[#allocation5 + $0x178] sm:$0xff]  ;;  %v368_v6 = vld [vmem:[#allocation7 + $0x168] sm:$0xff]  ;;  %v108_v10 = vld [vmem:[#allocation5 + $0x160] sm:$0xff]  ;;  %v799_v11 = vpack.c.bf16 %v365_v3, %v363_v1 }
  0x57   :  { %786 = vmatprep.subr.bf16.mxu1 %v785_v28  ;;  %v370_v7 = vld [vmem:[#allocation7 + $0x178] sm:$0xff]  ;;  %v705_v12 = vpack.c.bf16 %v111_v5, %v109_v4  ;;  %v110_v13 = vld [vmem:[#allocation5 + $0x170] sm:$0xff]  ;;  %v367_v14 = vld [vmem:[#allocation7 + $0x160] sm:$0xff] }
  0x58   :  { %v369_v15 = vld [vmem:[#allocation7 + $0x170] sm:$0xff]  ;;  %v801_v16 = vpack.c.bf16 %v370_v7, %v368_v6  ;;  %v113_v17 = vld [vmem:[#allocation5 + $0x188] sm:$0xff]  ;;  %v115_v18 = vld [vmem:[#allocation5 + $0x198] sm:$0xff]  ;;  %v707_v24 = vpack.c.bf16 %v110_v13, %v108_v10 }
  0x59   :  { %692 = vmatpush1.bf16.msra.mxu0 %v691_v34  ;;  %v1080_v19 = vld [vmem:[#allocation2] sm:$0x7]  ;;  %v372_v20 = vld [vmem:[#allocation7 + $0x188] sm:$0xff]  ;;  %v803_v25 = vpack.c.bf16 %v369_v15, %v367_v14  ;;  %v709_v26 = vpack.c.bf16 %v115_v18, %v113_v17  ;;  %v112_v27 = vld [vmem:[#allocation5 + $0x180] sm:$0xff]  ;;  %v1093_v15 = vsub.s32 0, %v1075_v59 }
  0x5a   :  { %788 = vmatpush1.bf16.msra.mxu1 %v787_v35  ;;  %694 = vmatprep.subr.bf16.mxu0 %v693_v36  ;;  %v374_v21 = vld [vmem:[#allocation7 + $0x198] sm:$0xff]  ;;  %v168_v22 = vrot.slane %v1080_v19, %v1078_v8  ;;  %v114_v28 = vld [vmem:[#allocation5 + $0x190] sm:$0xff]  ;;  %v371_v29 = vld [vmem:[#allocation7 + $0x180] sm:$0xff] }
  0x5b   :  { %790 = vmatprep.subr.bf16.mxu1 %v789_v40  ;;  %v318_v23 = vld [vmem:[%s1142_s1] sm:$0x7]  ;;  %v805_v31 = vpack.c.bf16 %v374_v21, %v372_v20  ;;  %v373_v32 = vld [vmem:[#allocation7 + $0x190] sm:$0xff]  ;;  %v117_v33 = vld [vmem:[#allocation5 + $0x1a8] sm:$0xff]  ;;  %v711_v38 = vpack.c.bf16 %v114_v28, %v112_v27  ;;  %v164_v27 = vrot.slane %v1080_v19, %v1093_v15 }
  0x5c   :  { %vm319_vm0 = vcmp.gt.f32.partialorder %v318_v23, 0.0  ;;  %v119_v34 = vld [vmem:[#allocation5 + $0x1b8] sm:$0xff]  ;;  %240 = vmatprep.mubr.f32.mxu0 %v168_v22  ;;  %v376_v36 = vld [vmem:[#allocation7 + $0x1a8] sm:$0xff]  ;;  %v807_v39 = vpack.c.bf16 %v373_v32, %v371_v29  ;;  %v116_v41 = vld [vmem:[#allocation5 + $0x1a0] sm:$0xff] }
  0x5d   :  { %696 = vmatpush1.bf16.msra.mxu0 %v695_v47  ;;  %v320_v30 = vsel %vm319_vm0, %v1080_v19, 0.0  ;;  %v378_v37 = vld [vmem:[#allocation7 + $0x1b8] sm:$0xff]  ;;  %v713_v40 = vpack.c.bf16 %v119_v34, %v117_v33  ;;  %v118_v42 = vld [vmem:[#allocation5 + $0x1b0] sm:$0xff]  ;;  %v375_v43 = vld [vmem:[#allocation7 + $0x1a0] sm:$0xff] }
  0x5e   :  { %792 = vmatpush1.bf16.msra.mxu1 %v791_v48  ;;  %698 = vmatprep.subr.bf16.mxu0 %v697_v49  ;;  %v321_v35 = vmul.f32 1.442695, %v320_v30  ;;  %v809_v44 = vpack.c.bf16 %v378_v37, %v376_v36  ;;  %v377_v45 = vld [vmem:[#allocation7 + $0x1b0] sm:$0xff]  ;;  %v121_v47 = vld [vmem:[#allocation5 + $0x1c8] sm:$0xff]  ;;  %v123_v48 = vld [vmem:[#allocation5 + $0x1d8] sm:$0xff]  ;;  %v715_v51 = vpack.c.bf16 %v118_v42, %v116_v41 }
  0x5f   :  { %794 = vmatprep.subr.bf16.mxu1 %v793_v53  ;;  %v380_v49 = vld [vmem:[#allocation7 + $0x1c8] sm:$0xff]  ;;  %v382_v50 = vld [vmem:[#allocation7 + $0x1d8] sm:$0xff]  ;;  %v811_v52 = vpack.c.bf16 %v377_v45, %v375_v43  ;;  %v717_v53 = vpack.c.bf16 %v123_v48, %v121_v47  ;;  %v120_v54 = vld [vmem:[#allocation5 + $0x1c0] sm:$0xff] }
  0x60   :  { %868 = vpow2.f32 %v321_v35  ;;  %v122_v55 = vld [vmem:[#allocation5 + $0x1d0] sm:$0xff]  ;;  %v379_v56 = vld [vmem:[#allocation7 + $0x1c0] sm:$0xff]  ;;  %v813_v57 = vpack.c.bf16 %v382_v50, %v380_v49  ;;  %v386_v63 = vld [vmem:[#allocation7 + $0x1f8] sm:$0xff] }
  0x61   :  { %700 = vmatpush1.bf16.msra.mxu0 %v699_v60  ;;  %v381_v58 = vld [vmem:[#allocation7 + $0x1d0] sm:$0xff]  ;;  %v125_v60 = vld [vmem:[#allocation5 + $0x1e8] sm:$0xff]  ;;  %v719_v0 = vpack.c.bf16 %v122_v55, %v120_v54  ;;  %v124_v3 = vld [vmem:[#allocation5 + $0x1e0] sm:$0xff]  ;;  %v993_v54 = vmov 0.0  }
  0x62   :  { %796 = vmatpush1.bf16.msra.mxu1 %v795_v61  ;;  %702 = vmatprep.subr.bf16.mxu0 %v701_v62  ;;  %v127_v61 = vld [vmem:[#allocation5 + $0x1f8] sm:$0xff]  ;;  %v384_v62 = vld [vmem:[#allocation7 + $0x1e8] sm:$0xff]  ;;  %v815_v1 = vpack.c.bf16 %v381_v58, %v379_v56  ;;  %v126_v4 = vld [vmem:[#allocation5 + $0x1f0] sm:$0xff] }
  0x63   :  { %798 = vmatprep.subr.bf16.mxu1 %v797_v2  ;;  %v721_v2 = vpack.c.bf16 %v127_v61, %v125_v60  ;;  %v383_v5 = vld [vmem:[#allocation7 + $0x1e0] sm:$0xff]  ;;  %v817_v7 = vpack.c.bf16 %v386_v63, %v384_v62  ;;  %v129_v10 = vld [vmem:[#allocation5 + $0x208] sm:$0xff]  ;;  %v390_v14 = vld [vmem:[#allocation7 + $0x218] sm:$0xff] }
  0x64   :  { %v388_v13 = vld [vmem:[#allocation7 + $0x208] sm:$0xff]  ;;  %v128_v20 = vld [vmem:[#allocation5 + $0x200] sm:$0xff]  ;;  %v130_v21 = vld [vmem:[#allocation5 + $0x210] sm:$0xff] }
  0x65   :  { %704 = vmatpush1.bf16.msra.mxu0 %v703_v9  ;;  %v385_v9 = vld [vmem:[#allocation7 + $0x1f0] sm:$0xff]  ;;  %v387_v22 = vld [vmem:[#allocation7 + $0x200] sm:$0xff]  ;;  %v821_v23 = vpack.c.bf16 %v390_v14, %v388_v13  ;;  %v392_v28 = vld [vmem:[#allocation7 + $0x228] sm:$0xff]  ;;  %v727_v30 = vpack.c.bf16 %v130_v21, %v128_v20 }
  0x66   :  { %800 = vmatpush1.bf16.msra.mxu1 %v799_v11  ;;  %706 = vmatprep.subr.bf16.mxu0 %v705_v12  ;;  %v131_v11 = vld [vmem:[#allocation5 + $0x218] sm:$0xff]  ;;  %v819_v17 = vpack.c.bf16 %v385_v9, %v383_v5  ;;  %v132_v34 = vld [vmem:[#allocation5 + $0x220] sm:$0xff]  ;;  %v134_v35 = vld [vmem:[#allocation5 + $0x230] sm:$0xff] }
  0x67   :  { %802 = vmatprep.subr.bf16.mxu1 %v801_v16  ;;  %v723_v16 = vpack.c.bf16 %v126_v4, %v124_v3  ;;  %v725_v18 = vpack.c.bf16 %v131_v11, %v129_v10  ;;  %v394_v29 = vld [vmem:[#allocation7 + $0x238] sm:$0xff]  ;;  %v391_v36 = vld [vmem:[#allocation7 + $0x220] sm:$0xff]  ;;  %v396_v41 = vld [vmem:[#allocation7 + $0x248] sm:$0xff]  ;;  %v731_v43 = vpack.c.bf16 %v134_v35, %v132_v34 }
  0x68   :  { %v825_v37 = vpack.c.bf16 %v394_v29, %v392_v28  ;;  %v398_v42 = vld [vmem:[#allocation7 + $0x258] sm:$0xff]  ;;  %v136_v47 = vld [vmem:[#allocation5 + $0x240] sm:$0xff]  ;;  %v138_v48 = vld [vmem:[#allocation5 + $0x250] sm:$0xff] }
  0x69   :  { %708 = vmatpush1.bf16.msra.mxu0 %v707_v24  ;;  %v389_v24 = vld [vmem:[#allocation7 + $0x210] sm:$0xff]  ;;  %v395_v49 = vld [vmem:[#allocation7 + $0x240] sm:$0xff]  ;;  %v829_v50 = vpack.c.bf16 %v398_v42, %v396_v41  ;;  %v400_v55 = vld [vmem:[#allocation7 + $0x268] sm:$0xff] }
  0x6a   :  { %804 = vmatpush1.bf16.msra.mxu1 %v803_v25  ;;  %710 = vmatprep.subr.bf16.mxu0 %v709_v26  ;;  %v1088_v6 = vpop.eup %868  ;;  %v133_v25 = vld [vmem:[#allocation5 + $0x228] sm:$0xff]  ;;  %v135_v26 = vld [vmem:[#allocation5 + $0x238] sm:$0xff]  ;;  %v823_v32 = vpack.c.bf16 %v389_v24, %v387_v22  ;;  %v140_v61 = vld [vmem:[#allocation5 + $0x260] sm:$0xff] }
  0x6b   :  { %806 = vmatprep.subr.bf16.mxu1 %v805_v31  ;;  %v428_v12 = vrot.slane %v1088_v6, %v1078_v8  ;;  %v424_v31 = vrot.slane %v1088_v6, %v1093_v15  ;;  %v729_v33 = vpack.c.bf16 %v135_v26, %v133_v25  ;;  %v402_v56 = vld [vmem:[#allocation7 + $0x278] sm:$0xff]  ;;  %v142_v62 = vld [vmem:[#allocation5 + $0x270] sm:$0xff]  ;;  %v399_v63 = vld [vmem:[#allocation7 + $0x260] sm:$0xff] }
  0x6c   :  { %v147_v3 = vld [vmem:[#allocation5 + $0x298] sm:$0xff]  ;;  %v404_v4 = vld [vmem:[#allocation7 + $0x288] sm:$0xff]  ;;  %v144_v11 = vld [vmem:[#allocation5 + $0x280] sm:$0xff] }
  0x6d   :  { %712 = vmatpush1.bf16.msra.mxu0 %v711_v38  ;;  %511 = vmatprep.mubr.f32.mxu1 %v428_v12  ;;  %v393_v38 = vld [vmem:[#allocation7 + $0x230] sm:$0xff]  ;;  %v406_v5 = vld [vmem:[#allocation7 + $0x298] sm:$0xff]  ;;  %v403_v13 = vld [vmem:[#allocation7 + $0x280] sm:$0xff] }
  0x6e   :  { %808 = vmatpush1.bf16.msra.mxu1 %v807_v39  ;;  %714 = vmatprep.subr.bf16.mxu0 %v713_v40  ;;  %v137_v39 = vld [vmem:[#allocation5 + $0x248] sm:$0xff]  ;;  %v139_v40 = vld [vmem:[#allocation5 + $0x258] sm:$0xff]  ;;  %v146_v12 = vld [vmem:[#allocation5 + $0x290] sm:$0xff]  ;;  %v837_v14 = vpack.c.bf16 %v406_v5, %v404_v4 }
  0x6f   :  { %810 = vmatprep.subr.bf16.mxu1 %v809_v44  ;;  %v827_v44 = vpack.c.bf16 %v393_v38, %v391_v36  ;;  %v733_v45 = vpack.c.bf16 %v139_v40, %v137_v39  ;;  %v408_v20 = vld [vmem:[#allocation7 + $0x2a8] sm:$0xff]  ;;  %v410_v21 = vld [vmem:[#allocation7 + $0x2b8] sm:$0xff]  ;;  %v743_v22 = vpack.c.bf16 %v146_v12, %v144_v11  ;;  %v148_v25 = vld [vmem:[#allocation5 + $0x2a0] sm:$0xff] }
  0x70   :  { %v150_v26 = vld [vmem:[#allocation5 + $0x2b0] sm:$0xff]  ;;  %v841_v28 = vpack.c.bf16 %v410_v21, %v408_v20  ;;  %v411_v39 = vld [vmem:[#allocation7 + $0x2c0] sm:$0xff]  ;;  %v157_v42 = vld [vmem:[#allocation5 + $0x2e8] sm:$0xff] }
  0x71   :  { %716 = vmatpush1.bf16.msra.mxu0 %v715_v51  ;;  %v397_v51 = vld [vmem:[#allocation7 + $0x250] sm:$0xff]  ;;  %v747_v34 = vpack.c.bf16 %v150_v26, %v148_v25 }
  0x72   :  { %812 = vmatpush1.bf16.msra.mxu1 %v811_v52  ;;  %718 = vmatprep.subr.bf16.mxu0 %v717_v53  ;;  %v141_v52 = vld [vmem:[#allocation5 + $0x268] sm:$0xff]  ;;  %v143_v53 = vld [vmem:[#allocation5 + $0x278] sm:$0xff]  ;;  %v831_v58 = vpack.c.bf16 %v397_v51, %v395_v49  ;;  %v409_v29 = vld [vmem:[#allocation7 + $0x2b0] sm:$0xff] }
  0x73   :  { %814 = vmatprep.subr.bf16.mxu1 %v813_v57  ;;  %v735_v57 = vpack.c.bf16 %v138_v48, %v136_v47  ;;  %v737_v60 = vpack.c.bf16 %v143_v53, %v141_v52  ;;  %v154_v38 = vld [vmem:[#allocation5 + $0x2d0] sm:$0xff]  ;;  %v415_v53 = vld [vmem:[#allocation7 + $0x2e0] sm:$0xff] }
  0x74   :  { %v413_v41 = vld [vmem:[#allocation7 + $0x2d0] sm:$0xff] }
  0x75   :  { %720 = vmatpush1.bf16.msra.mxu0 %v719_v0  ;;  %v833_v0 = vpack.c.bf16 %v402_v56, %v400_v55  ;;  %v847_v48 = vpack.c.bf16 %v413_v41, %v411_v39  ;;  %v158_v51 = vld [vmem:[#allocation5 + $0x2f0] sm:$0xff]  ;;  %v171_v55 = vsub.s32 2, %v1075_v59 }
  0x76   :  { %816 = vmatpush1.bf16.msra.mxu1 %v815_v1  ;;  %722 = vmatprep.subr.bf16.mxu0 %v721_v2  ;;  %v401_v1 = vld [vmem:[#allocation7 + $0x270] sm:$0xff]  ;;  %v145_v2 = vld [vmem:[#allocation5 + $0x288] sm:$0xff] }
  0x77   :  { %818 = vmatprep.subr.bf16.mxu1 %v817_v7  ;;  %v739_v7 = vpack.c.bf16 %v142_v62, %v140_v61  ;;  %v835_v9 = vpack.c.bf16 %v401_v1, %v399_v63  ;;  %v741_v10 = vpack.c.bf16 %v147_v3, %v145_v2  ;;  %v994_v61 = vmov 1966171168   ;;  %v419_v63 = vld [vmem:[%s1145_s4] sm:$0x3]  ;;  %s996_s4 = smov [#allocation9]  }
  0x78   :  { %v593_v62 = vunpack.c.l.s4 %v994_v61  ;;  %v440_v1 = vrot.slane %v419_v63, %v1093_v15  ;;  %v444_v2 = vrot.slane %v419_v63, %v1078_v8  ;;  %s647_s14 = sshll.u32 %s996_s4, 4  ;;  %s648_s14 = int_to_ptr.vmem [resolvable:$true] %s647_s14 }
  0x79   :  { %724 = vmatpush1.bf16.msra.mxu0 %v723_v16  ;;  %v405_v16 = vld [vmem:[#allocation7 + $0x290] sm:$0xff] }
  0x7a   :  { %820 = vmatpush1.bf16.msra.mxu1 %v819_v17  ;;  %726 = vmatprep.subr.bf16.mxu0 %v725_v18  ;;  %v149_v17 = vld [vmem:[#allocation5 + $0x2a8] sm:$0xff]  ;;  %v151_v18 = vld [vmem:[#allocation5 + $0x2b8] sm:$0xff] }
  0x7b   :  { %822 = vmatprep.subr.bf16.mxu1 %v821_v23  ;;  %v839_v23 = vpack.c.bf16 %v405_v16, %v403_v13  ;;  %v745_v24 = vpack.c.bf16 %v151_v18, %v149_v17 }
  0x7c   :  { %241 = vmatmul.mubr.f32.vlgmr.msra.gmra.mrb[0].mxu0 %v164_v27  ;;  %v407_v27 = vld [vmem:[#allocation7 + $0x2a0] sm:$0xff] }
  0x7d   :  { %728 = vmatpush1.bf16.msra.mxu0 %v727_v30  ;;  %512 = vmatmul.mubr.f32.vlgmr.msra.gmra.mrb[0].mxu1 %v424_v31  ;;  %v153_v30 = vld [vmem:[#allocation5 + $0x2c8] sm:$0xff]  ;;  %v155_v31 = vld [vmem:[#allocation5 + $0x2d8] sm:$0xff]  ;;  %v843_v35 = vpack.c.bf16 %v409_v29, %v407_v27 }
  0x7e   :  { %824 = vmatpush1.bf16.msra.mxu1 %v823_v32  ;;  %730 = vmatprep.subr.bf16.mxu0 %v729_v33  ;;  %v412_v32 = vld [vmem:[#allocation7 + $0x2c8] sm:$0xff]  ;;  %v414_v33 = vld [vmem:[#allocation7 + $0x2d8] sm:$0xff]  ;;  %v749_v36 = vpack.c.bf16 %v155_v31, %v153_v30 }
  0x7f   :  { %826 = vmatprep.subr.bf16.mxu1 %v825_v37  ;;  %311 = vmatprep.mubr.f32.mxu0 %v993_v54  ;;  %v152_v37 = vld [vmem:[#allocation5 + $0x2c0] sm:$0xff]  ;;  %v845_v40 = vpack.c.bf16 %v414_v33, %v412_v32 }
  0x80   :  { %582 = vmatprep.mubr.f32.mxu1 %v993_v54  ;;  %v751_v47 = vpack.c.bf16 %v154_v38, %v152_v37  ;;  %v417_v54 = vld [vmem:[#allocation7 + $0x2f0] sm:$0xff] }
  0x81   :  { %732 = vmatpush1.bf16.msra.mxu0 %v731_v43  ;;  %v159_v43 = vld [vmem:[#allocation5 + $0x2f8] sm:$0xff] }
  0x82   :  { %828 = vmatpush1.bf16.msra.mxu1 %v827_v44  ;;  %734 = vmatprep.subr.bf16.mxu0 %v733_v45  ;;  %v416_v44 = vld [vmem:[#allocation7 + $0x2e8] sm:$0xff]  ;;  %v418_v45 = vld [vmem:[#allocation7 + $0x2f8] sm:$0xff]  ;;  %v753_v49 = vpack.c.bf16 %v159_v43, %v157_v42 }
  0x83   :  { %830 = vmatprep.subr.bf16.mxu1 %v829_v50  ;;  %v156_v50 = vld [vmem:[#allocation5 + $0x2e0] sm:$0xff]  ;;  %v849_v52 = vpack.c.bf16 %v418_v45, %v416_v44 }
  0x84   :  { %v755_v56 = vpack.c.bf16 %v158_v51, %v156_v50 }
  0x85   :  { %736 = vmatpush1.bf16.msra.mxu0 %v735_v57  ;;  %v851_v57 = vpack.c.bf16 %v417_v54, %v415_v53 }
  0x86   :  { %832 = vmatpush1.bf16.msra.mxu1 %v831_v58  ;;  %738 = vmatprep.subr.bf16.mxu0 %v737_v60  ;;  %v172_v58 = vrot.slane %v1080_v19, %v171_v55  ;;  %v432_v60 = vrot.slane %v1088_v6, %v171_v55 }
  0x87   :  { %834 = vmatprep.subr.bf16.mxu1 %v833_v0  ;;  %v594_v0 = vunpack.c.0.s8 %v593_v62 }
  0x89   :  { %740 = vmatpush1.bf16.msra.mxu0 %v739_v7  ;;  %v597_v19 = vsub.s32 %v594_v0, %v1075_v59 }
  0x8a   :  { %836 = vmatpush1.bf16.msra.mxu1 %v835_v9  ;;  %742 = vmatprep.subr.bf16.mxu0 %v741_v10 }
  0x8b   :  { %838 = vmatprep.subr.bf16.mxu1 %v837_v14 }
  0x8d   :  { %744 = vmatpush1.bf16.msra.mxu0 %v743_v22 }
  0x8e   :  { %840 = vmatpush1.bf16.msra.mxu1 %v839_v23  ;;  %746 = vmatprep.subr.bf16.mxu0 %v745_v24 }
  0x8f   :  { %842 = vmatprep.subr.bf16.mxu1 %v841_v28 }
  0x91   :  { %748 = vmatpush1.bf16.msra.mxu0 %v747_v34 }
  0x92   :  { %844 = vmatpush1.bf16.msra.mxu1 %v843_v35  ;;  %750 = vmatprep.subr.bf16.mxu0 %v749_v36 }
  0x93   :  { %846 = vmatprep.subr.bf16.mxu1 %v845_v40 }
  0x95   :  { %752 = vmatpush1.bf16.msra.mxu0 %v751_v47 }
  0x96   :  { %848 = vmatpush1.bf16.msra.mxu1 %v847_v48  ;;  %754 = vmatprep.subr.bf16.mxu0 %v753_v49 }
  0x97   :  { %850 = vmatprep.subr.bf16.mxu1 %v849_v52 }
  0x99   :  { %756 = vmatpush1.bf16.msra.mxu0 %v755_v56 }
  0x9a   :  { %852 = vmatpush1.bf16.msra.mxu1 %v851_v57 }
  0x9c   :  { %312 = vmatmul.mubr.f32.vlgmr.msra.gmra.mrb[0].mxu0 %v172_v58 }
  0x9d   :  { %583 = vmatmul.mubr.f32.vlgmr.msra.gmra.mrb[0].mxu1 %v432_v60 }
 0x16f   :  { %v313_v3 = vpop.f32.mrb[0].mxu0 }
 0x170   :  { %v584_v4 = vpop.f32.mrb[0].mxu1  ;;  %v315_v5 = vpop.f32.mrb[1].mxu0 }
 0x171   :  { %v853_v6 = vadd.f32 %v584_v4, %v440_v1  ;;  %v591_v7 = vcombine.low %v313_v3, %v315_v5  ;;  %v586_v9 = vpop.f32.mrb[1].mxu1 }
 0x172   :  { %v854_v10 = vadd.f32 %v586_v9, %v444_v2 }
 0x173   :  { %v598_v11 = vrot.slane %v591_v7, %v597_v19 }
 0x174   :  { %v614_v12 = vcombine.low %v853_v6, %v854_v10 }
 0x175   :  { %v605_v8 = vrot.slane %v598_v11, %v597_v19 }
 0x176   :  { %v621_v59 = vrot.slane %v614_v12, %v597_v19 }
 0x177   :  { %611 = vst.msk [vmem:[#allocation8] sm:$0x3] %vm1109_vm1, %v605_v8 }
 0x178   :  { %947 = shalt.err (!%p944_p0)
}
 0x179   :  { %s948_s18 = scalar_lea.hbm %s1146_s5, 32 }
 0x17a   :  { %p949_p1 = scmp.ne.s32.totalorder %s1146_s5, %s948_s18  ;;  %p952_p2 = scmp.lt.u32.totalorder %s948_s18, %s1146_s5 }
 0x17c   :  { %p954_p3 = pnand %p952_p2, %p949_p1 }
 0x17e   :  { %957 = shalt.err (!%p954_p3)
}
 0x17f   :  { %640 = dma.vmem_to_hbm [thread:$0]  %s638_s13, 32, %s1146_s5, [#allocation4]   ;;  %v628_v46 = vrot.slane %v621_v59, %v597_v19 }
 0x180   :  { %s958_s24 = scalar_lea.vmem %s648_s14, 32  ;;  %p963_p5 = scmp.lt.s32.totalorder %s648_s14, %s648_s14 }
 0x181   :  { %630 = vst.msk [vmem:[#allocation9] sm:$0x3] %vm1109_vm1, %v628_v46  ;;  %p959_p4 = scmp.ne.s32.totalorder %s648_s14, %s958_s24  ;;  %p964_p6 = scmp.lt.s32.totalorder %s958_s24, %s958_s24 }
 0x183   :  { %p965_p7 = por %p964_p6, %p963_p5 }
 0x185   :  { %p966_p8 = pnand %p965_p7, %p959_p4 }
 0x187   :  { %969 = shalt.err (!%p966_p8)
}
 0x188   :  { %s970_s27 = scalar_lea.hbm %s1147_s6, 32 }
 0x189   :  { %p971_p9 = scmp.ne.s32.totalorder %s1147_s6, %s970_s27  ;;  %p974_p10 = scmp.lt.u32.totalorder %s970_s27, %s1147_s6 }
 0x18b   :  { %p976_p11 = pnand %p974_p10, %p971_p9 }
 0x18d   :  { %979 = shalt.err (!%p976_p11)
}
 0x18e   :  { %650 = dma.vmem_to_hbm [thread:$0]  %s648_s14, 32, %s1147_s6, [#allocation10]  }
 0x18f   :  { %984 = dma.done.wait [#allocation4], 32  }
 0x190   :  { %985 = vsyncadd [#allocation4], 4294967264 }
 0x191   :  { %986 = dma.done.wait [#allocation10], 32  }
 0x192   :  { %987 = vsyncadd [#allocation10], 4294967264 }
 0x193   :  { %657 = vsyncpa [#allocation3], 1 }
 0x194   :  { %658 = vsyncpa [#allocation6], 1 }
 0x195   :  { %659 = vsyncpa [#allocation4], 1 }
 0x196   :  { %660 = vsyncpa [#allocation10], 1 }

</bundles_post_ra>
